<compile_context>
chip_gen: v5e
topology: v5e:2x2
jax: 0.10.0
libtpu: 0.0.40
codegen_flags: <defaults>
</compile_context>

<pallas_src>
import jax
import jax.numpy as jnp
from jax.experimental import pallas as pl
from jax.experimental.pallas import tpu as pltpu


# ----------------------------- Pallas kernel --------------------------------

def _solver_kernel(x_ref, t_ref, w1_ref, w1t_ref, w2_ref, b2_ref, o_ref):
    """Lane-dense packed MLP solver tile.

    x_ref  : (tm, G*D)   x.dtype  packed input rows (G logical rows per packed row)
    t_ref  : (tm, G+1)   bf16     per-group t values + ones column (bias lane)
    w1_ref : (G*D, G*H)  bf16     block-diagonal first-layer weight
    w1t_ref: (G+1, G*H)  bf16     block-diag t-conditioning weight with b1 stacked
    w2_ref : (G*H, G*D)  bf16     block-diagonal second-layer weight
    b2_ref : (1,  G*D)   f32
    o_ref  : (tm, G*D)   x.dtype
    """
    # Cast to bf16 *inside* the kernel: no extra HBM pass in the wrapper.
    x = x_ref[...].astype(jnp.bfloat16)
    # First layer entirely on the MXU:  x@W1 + [t,1]@[w1t; b1], f32 accumulation.
    h = jnp.dot(x, w1_ref[...], preferred_element_type=jnp.float32)
    h = h + jnp.dot(t_ref[...], w1t_ref[...], preferred_element_type=jnp.float32)
    h = jnp.tanh(h)                                        # EUP; free under mem-bound
    y = jnp.dot(h.astype(jnp.bfloat16), w2_ref[...],
                preferred_element_type=jnp.float32) + b2_ref[...]
    o_ref[...] = y.astype(o_ref.dtype)                     # emit consumer dtype


# --------------------------- packing helpers ---------------------------------

def _pick_groups(D):
    """Logical rows per packed row so the packed lane width is 256 (or 128)."""
    if D % 128 == 0:
        return 1
    if 256 % D == 0:
        return 256 // D        # 256 lanes: native MXU width on v6e/v7x, fine on v5e
    if 128 % D == 0:
        return 128 // D
    return 1                   # TODO(synk): lane-sparse fallback for odd D


def _pack_params(params, G):
    """Block-diagonal / tiled weights for lane-dense packing (b1 folded into w1t)."""
    w1, w1t, b1, w2, b2 = params
    eye = jnp.eye(G, dtype=jnp.float32)
    w1_bd = jnp.kron(eye, w1).astype(jnp.bfloat16)                   # (G*D, G*H)
    w1t_bd = jnp.kron(eye, w1t)                                      # (G,   G*H)
    w1t_aug = jnp.concatenate([w1t_bd, jnp.tile(b1, (1, G))],
                              axis=0).astype(jnp.bfloat16)           # (G+1, G*H)
    w2_bd = jnp.kron(eye, w2).astype(jnp.bfloat16)                   # (G*H, G*D)
    b2_t = jnp.tile(b2, (1, G)).astype(jnp.float32)                  # (1,   G*D)
    return w1_bd, w1t_aug, w2_bd, b2_t


# --------------------------- SolverWrapper forward ----------------------------

@jax.jit
def _forward_impl(x, t, params):
    # --- exact SolverWrapper.forward broadcast semantics ----------------------
    assert x.ndim - t.ndim == 1
    t = t[..., None]                                       # t.unsqueeze(-1)
    if t.shape[-3] == 1:
        t = jnp.repeat(t, x.shape[-3], axis=-3)            # repeat_interleave dim=-3
    if x.ndim == 4 and x.shape[0] != t.shape[0]:
        t = jnp.repeat(t, x.shape[0], axis=0)              # repeat_interleave dim=0
    # TODO(synk): if t.shape[0] not in {1, B} the reference module hands a
    #             batch-mismatched t to the injected solver; here it raises.

    # --- y = self.solver(x, t): synthetic MLP solver, hot path in Pallas ------
    B, C, L, D = x.shape
    H = params[0].shape[1]
    M = B * C * L
    G = _pick_groups(D)

    x2 = x.reshape(M, D)                                   # free row-major reshape
    t_flat = jnp.broadcast_to(t, (B, C, L, 1)).reshape(M)  # tiny (M elems)

    Mpad = (M + G - 1) // G * G
    if Mpad != M:                                          # rare: pad <= G-1 rows
        x2 = jnp.pad(x2, ((0, Mpad - M), (0, 0)))
        t_flat = jnp.pad(t_flat, (0, Mpad - M))

    Mp, DP, HP = Mpad // G, G * D, G * H
    xp = x2.reshape(Mp, DP)                                # arriving dtype, no cast
    t_aug = jnp.concatenate(
        [t_flat.reshape(Mp, G), jnp.ones((Mp, 1), t_flat.dtype)], axis=1
    ).astype(jnp.bfloat16)                                 # bias lane; tiny stream

    w1_bd, w1t_aug, w2_bd, b2_t = _pack_params(params, G)

    # Row tile: one full block for small problems (no grid / padding overhead);
    # otherwise 2048-row tiles => >= 2 grid steps, so v7x can split the
    # "parallel" row axis across its two TensorCores.
    tm = Mp if Mp <= 2048 else 2048
    grid = (pl.cdiv(Mp, tm),)                              # ragged tail masked by Pallas

    row = lambda shape: pl.BlockSpec(shape, lambda i: (i, 0))
    const = lambda shape: pl.BlockSpec(shape, lambda i: (0, 0))

    y = pl.pallas_call(
        _solver_kernel,
        out_shape=jax.ShapeDtypeStruct((Mp, DP), x.dtype),
        grid=grid,
        in_specs=[
            row((tm, DP)),             # x tile (cast to bf16 in-kernel)
            row((tm, G + 1)),          # [t, 1] tile (bf16)
            const((DP, HP)),           # W1 block-diag (resident)
            const((G + 1, HP)),        # [w1t; b1] block-diag (resident)
            const((HP, DP)),           # W2 block-diag (resident)
            const((1, DP)),            # b2
        ],
        out_specs=row((tm, DP)),
        compiler_params=pltpu.CompilerParams(
            dimension_semantics=("parallel",),             # v7x: rows over 2 TCs
            vmem_limit_bytes=32 * 1024 * 1024,
        ),
    )(xp, t_aug, w1_bd, w1t_aug, w2_bd, b2_t)

    y = y.reshape(Mpad, D)
    if Mpad != M:                                          # rare path only
        y = y[:M]
    return y.reshape(B, C, L, D)


def solver_wrapper_forward(x, t, params, backwards=False):
    """Exact port of SolverWrapper.forward (backwards flag is unused upstream too)."""
    del backwards
    return _forward_impl(x, t, params)


# ------------------------------ reference (f32) -------------------------------

def _solver_reference(x, t, params):
    w1, w1t, b1, w2, b2 = params
    B, C, L, D = x.shape
    tb = jnp.broadcast_to(t[..., None], (B, C, L, 1))
    h = jnp.tanh(x @ w1 + tb * w1t + b1)
    return h @ w2 + b2


# --------------------------------- main ----------------------------------------

def _init_params(key, D, H):
    k1, k2, k3, k4, k5 = jax.random.split(key, 5)
    w1 = jax.random.normal(k1, (D, H), jnp.float32) / jnp.sqrt(D)
    w1t = jax.random.normal(k2, (1, H), jnp.float32)
    b1 = 0.01 * jax.random.normal(k3, (1, H), jnp.float32)
    w2 = jax.random.normal(k4, (H, D), jnp.float32) / jnp.sqrt(H)
    b2 = 0.01 * jax.random.normal(k5, (1, D), jnp.float32)
    return (w1, w1t, b1, w2, b2)


if __name__ == "__main__":
    key = jax.random.PRNGKey(0)
    kx, kt, kp = jax.random.split(key, 3)

    B, C, L, D, H = 2, 4, 8, 32, 32
    x = jax.random.normal(kx, (B, C, L, D), jnp.float32)
    # t has one fewer dim than x; shape chosen so BOTH broadcast branches fire:
    # (1,1,L) -> unsqueeze -> (1,1,L,1) -> repeat C -> (1,C,L,1) -> repeat B -> (B,C,L,1)
    t = jax.random.uniform(kt, (1, 1, L), jnp.float32)

    params = _init_params(kp, D, H)

    y = solver_wrapper_forward(x, t, params)
    jax.block_until_ready(y)

    assert y.shape == (B, C, L, D), y.shape
    assert y.dtype == x.dtype, y.dtype

    # Loose correctness check vs. a pure-JAX f32 reference (kernel uses bf16 MXU ops).
    y_ref = _solver_reference(x, jnp.broadcast_to(t, (B, C, L)), params)
    max_err = float(jnp.max(jnp.abs(y.astype(jnp.float32) - y_ref)))
    assert max_err < 0.25, f"max abs error {max_err}"

    print("KERNEL_OK")
</pallas_src>

<mosaic_0001>
module attributes {stable_mosaic.version = 11 : i64} {
  func.func @_solver_kernel(%arg0: i32, %arg1: memref<8x256xf32, #tpu.memory_space<vmem>>, %arg2: memref<8x9xbf16, #tpu.memory_space<vmem>>, %arg3: memref<256x256xbf16, #tpu.memory_space<vmem>>, %arg4: memref<9x256xbf16, #tpu.memory_space<vmem>>, %arg5: memref<256x256xbf16, #tpu.memory_space<vmem>>, %arg6: memref<1x256xf32, #tpu.memory_space<vmem>>, %arg7: memref<8x256xf32, #tpu.memory_space<vmem>>) attributes {dimension_semantics = [#tpu.dimension_semantics<parallel>], iteration_bounds = array<i64: 1>, scalar_prefetch = 0 : i64, scratch_operands = 0 : i64, tpu.core_type = #tpu.core_type<tc>, window_params = [{transform_indices = @transform_0, window_bounds = array<i64: 8, 256>}, {transform_indices = @transform_1, window_bounds = array<i64: 8, 9>}, {pipeline_mode = #tpu.pipeline_mode<synchronous>, transform_indices = @transform_2, window_bounds = array<i64: 256, 256>}, {pipeline_mode = #tpu.pipeline_mode<synchronous>, transform_indices = @transform_3, window_bounds = array<i64: 9, 256>}, {pipeline_mode = #tpu.pipeline_mode<synchronous>, transform_indices = @transform_4, window_bounds = array<i64: 256, 256>}, {pipeline_mode = #tpu.pipeline_mode<synchronous>, transform_indices = @transform_5, window_bounds = array<i64: 1, 256>}, {transform_indices = @transform_6, window_bounds = array<i64: 8, 256>}]} {
    %c0 = arith.constant 0 : index
    %c0_0 = arith.constant 0 : index
    %0 = vector.load %arg1[%c0, %c0_0] : memref<8x256xf32, #tpu.memory_space<vmem>>, vector<8x256xf32>
    %1 = arith.truncf %0 : vector<8x256xf32> to vector<8x256xbf16>
    %c0_1 = arith.constant 0 : index
    %c0_2 = arith.constant 0 : index
    %2 = vector.load %arg3[%c0_1, %c0_2] : memref<256x256xbf16, #tpu.memory_space<vmem>>, vector<256x256xbf16>
    %cst = arith.constant dense<0.000000e+00> : vector<8x256xf32>
    %3 = tpu.matmul %1, %2, %cst {dimension_numbers = #tpu.dot_dimension_numbers<[1], [0], [0], [1], [0, 0, 1, 1], [], []>} : vector<8x256xbf16>, vector<256x256xbf16>, vector<8x256xf32> -> vector<8x256xf32>
    %c0_3 = arith.constant 0 : index
    %c0_4 = arith.constant 0 : index
    %4 = vector.load %arg2[%c0_3, %c0_4] : memref<8x9xbf16, #tpu.memory_space<vmem>>, vector<8x9xbf16>
    %c0_5 = arith.constant 0 : index
    %c0_6 = arith.constant 0 : index
    %5 = vector.load %arg4[%c0_5, %c0_6] : memref<9x256xbf16, #tpu.memory_space<vmem>>, vector<9x256xbf16>
    %cst_7 = arith.constant dense<0.000000e+00> : vector<8x256xf32>
    %6 = tpu.matmul %4, %5, %cst_7 {dimension_numbers = #tpu.dot_dimension_numbers<[1], [0], [0], [1], [0, 0, 1, 1], [], []>} : vector<8x9xbf16>, vector<9x256xbf16>, vector<8x256xf32> -> vector<8x256xf32>
    %7 = arith.addf %3, %6 : vector<8x256xf32>
    %8 = math.tanh %7 : vector<8x256xf32>
    %9 = arith.truncf %8 : vector<8x256xf32> to vector<8x256xbf16>
    %c0_8 = arith.constant 0 : index
    %c0_9 = arith.constant 0 : index
    %10 = vector.load %arg5[%c0_8, %c0_9] : memref<256x256xbf16, #tpu.memory_space<vmem>>, vector<256x256xbf16>
    %cst_10 = arith.constant dense<0.000000e+00> : vector<8x256xf32>
    %11 = tpu.matmul %9, %10, %cst_10 {dimension_numbers = #tpu.dot_dimension_numbers<[1], [0], [0], [1], [0, 0, 1, 1], [], []>} : vector<8x256xbf16>, vector<256x256xbf16>, vector<8x256xf32> -> vector<8x256xf32>
    %c0_11 = arith.constant 0 : index
    %c0_12 = arith.constant 0 : index
    %12 = vector.load %arg6[%c0_11, %c0_12] : memref<1x256xf32, #tpu.memory_space<vmem>>, vector<1x256xf32>
    %13 = vector.broadcast %12 : vector<1x256xf32> to vector<8x256xf32>
    %14 = arith.addf %11, %13 : vector<8x256xf32>
    %c0_13 = arith.constant 0 : index
    %c0_14 = arith.constant 0 : index
    %15 = vector.load %arg7[%c0_13, %c0_14] : memref<8x256xf32, #tpu.memory_space<vmem>>, vector<8x256xf32>
    tpu.vector_store %arg7[%c0_13, %c0_14], %14 {strides = array<i32>} : memref<8x256xf32, #tpu.memory_space<vmem>>, vector<8x256xf32>,
    return
  }
  func.func @transform_0(%arg0: i32) -> (i32, i32) {
    %c0_i32 = arith.constant 0 : i32
    %c0_i32_0 = arith.constant 0 : i32
    return %arg0, %c0_i32 : i32, i32
  }
  func.func @transform_1(%arg0: i32) -> (i32, i32) {
    %c0_i32 = arith.constant 0 : i32
    %c0_i32_0 = arith.constant 0 : i32
    return %arg0, %c0_i32 : i32, i32
  }
  func.func @transform_2(%arg0: i32) -> (i32, i32) {
    %c0_i32 = arith.constant 0 : i32
    %c0_i32_0 = arith.constant 0 : i32
    %c0_i32_1 = arith.constant 0 : i32
    return %c0_i32, %c0_i32_0 : i32, i32
  }
  func.func @transform_3(%arg0: i32) -> (i32, i32) {
    %c0_i32 = arith.constant 0 : i32
    %c0_i32_0 = arith.constant 0 : i32
    %c0_i32_1 = arith.constant 0 : i32
    return %c0_i32, %c0_i32_0 : i32, i32
  }
  func.func @transform_4(%arg0: i32) -> (i32, i32) {
    %c0_i32 = arith.constant 0 : i32
    %c0_i32_0 = arith.constant 0 : i32
    %c0_i32_1 = arith.constant 0 : i32
    return %c0_i32, %c0_i32_0 : i32, i32
  }
  func.func @transform_5(%arg0: i32) -> (i32, i32) {
    %c0_i32 = arith.constant 0 : i32
    %c0_i32_0 = arith.constant 0 : i32
    %c0_i32_1 = arith.constant 0 : i32
    return %c0_i32, %c0_i32_0 : i32, i32
  }
  func.func @transform_6(%arg0: i32) -> (i32, i32) {
    %c0_i32 = arith.constant 0 : i32
    %c0_i32_0 = arith.constant 0 : i32
    return %arg0, %c0_i32 : i32, i32
  }
}

</mosaic_0001>

<bundles_post_ra>
// kernel: _forward_impl.1
= control target key start
LH: loop header
LB: loop body
LE: loop exit
PB: predicated region body
PF: predicated region fallthrough
CT: control target
= control target key end

     0   :  { %vm75_vm0 = vcmask 1043456   ;;  %vm76_vm1 = vcmask 1044480   ;;  %v920_v9 = vmov 65535   ;;  %vm71_vm2 = vcmask 72704   ;;  %s1372_s2 = inlined_call_operand.vmem [shape: bf16[256,256], index: 2, kind: input, shape index: {}]   ;;  %s1373_s3 = inlined_call_operand.vmem [shape: bf16[9,256], index: 3, kind: input, shape index: {}]   ;;  %s1374_s1 = inlined_call_operand.vmem [shape: bf16[8,9], index: 1, kind: input, shape index: {}]   ;;  %s1375_s0 = inlined_call_operand.vmem [shape: f32[8,256], index: 0, kind: input, shape index: {}]   ;;  %s1376_s4 = inlined_call_operand.vmem [shape: bf16[256,256], index: 4, kind: input, shape index: {}]   ;;  %s1377_s5 = inlined_call_operand.vmem [shape: f32[1,256], index: 5, kind: input, shape index: {}]   ;;  %s1378_s6 = inlined_call_operand.vmem [shape: f32[8,256], index: 6, kind: output, shape index: {}]  }
   0x1   :  { %v651_v0 = vld [vmem:[%s1372_s2 + $0x70] sm:$0xf]  ;;  %v864_v1 = vld [vmem:[%s1372_s2 + $0x74] sm:$0xf0]  ;;  %v585_v5 = vld [vmem:[%s1373_s3] sm:$0xf] }
   0x2   :  { %v715_v2 = vld [vmem:[%s1372_s2 + $0xf0] sm:$0xf]  ;;  %v652_v3 = vor.u32 %v864_v1, %v651_v0  ;;  %v880_v4 = vld [vmem:[%s1372_s2 + $0xf4] sm:$0xf0]  ;;  %v882_v6 = vld [vmem:[%s1373_s3 + $0x4] sm:$0x10] }
   0x3   :  { %v716_v7 = vor.u32 %v880_v4, %v715_v2  ;;  %v586_v8 = vor.u32 %v882_v6, %v585_v5  ;;  %v77_v10 = vsel %vm75_vm0, 4294967295, %v920_v9  ;;  %v881_v11 = vld [vmem:[%s1373_s3 + $0x4] sm:$0xf]  ;;  %v587_v12 = vld [vmem:[%s1373_s3 + $0x8] sm:$0x10] }
   0x4   :  { %271 = vmatpush.bf16.msra.mxu2 %v652_v3  ;;  %v78_v13 = vsel %vm76_vm1, %v77_v10, 0  ;;  %v590_v14 = vor.u32 %v881_v11, %v587_v12  ;;  %v863_v15 = vld [vmem:[%s1372_s2 + $0x74] sm:$0xf]  ;;  %v653_v16 = vld [vmem:[%s1372_s2 + $0x78] sm:$0xf0] }
   0x5   :  { %284 = vmatpush.bf16.msra.mxu3 %v716_v7  ;;  %v80_v17 = vand.u32 %v586_v8, %v78_v13  ;;  %v656_v18 = vor.u32 %v863_v15, %v653_v16  ;;  %v879_v19 = vld [vmem:[%s1372_s2 + $0xf4] sm:$0xf]  ;;  %v717_v20 = vld [vmem:[%s1372_s2 + $0xf8] sm:$0xf0]  ;;  %v643_v21 = vld [vmem:[%s1372_s2 + $0x60] sm:$0xf] }
   0x6   :  { %v83_v22 = vand.u32 %v590_v14, %v78_v13  ;;  %v720_v23 = vor.u32 %v879_v19, %v717_v20  ;;  %v862_v24 = vld [vmem:[%s1372_s2 + $0x64] sm:$0xf0]  ;;  %v707_v25 = vld [vmem:[%s1372_s2 + $0xe0] sm:$0xf]  ;;  %v861_v29 = vld [vmem:[%s1372_s2 + $0x64] sm:$0xf] }
   0x7   :  { %v878_v26 = vld [vmem:[%s1372_s2 + $0xe4] sm:$0xf0]  ;;  %92 = vmatpush.bf16.msra.mxu0 %v80_v17  ;;  %v644_v27 = vor.u32 %v862_v24, %v643_v21  ;;  %v645_v30 = vld [vmem:[%s1372_s2 + $0x68] sm:$0xf0]  ;;  %v877_v31 = vld [vmem:[%s1372_s2 + $0xe4] sm:$0xf] }
   0x8   :  { %v708_v28 = vor.u32 %v878_v26, %v707_v25  ;;  %105 = vmatpush.bf16.msra.mxu1 %v83_v22  ;;  %v648_v32 = vor.u32 %v861_v29, %v645_v30  ;;  %v709_v33 = vld [vmem:[%s1372_s2 + $0xe8] sm:$0xf0]  ;;  %v635_v34 = vld [vmem:[%s1372_s2 + $0x50] sm:$0xf]  ;;  %v860_v35 = vld [vmem:[%s1372_s2 + $0x54] sm:$0xf0] }
   0x9   :  { %272 = vmatpush.bf16.msra.mxu2 %v644_v27  ;;  %v712_v36 = vor.u32 %v877_v31, %v709_v33  ;;  %v636_v37 = vor.u32 %v860_v35, %v635_v34  ;;  %v699_v38 = vld [vmem:[%s1372_s2 + $0xd0] sm:$0xf]  ;;  %v876_v39 = vld [vmem:[%s1372_s2 + $0xd4] sm:$0xf0]  ;;  %v859_v40 = vld [vmem:[%s1372_s2 + $0x54] sm:$0xf] }
   0xa   :  { %285 = vmatpush.bf16.msra.mxu3 %v708_v28  ;;  %v700_v41 = vor.u32 %v876_v39, %v699_v38  ;;  %v637_v42 = vld [vmem:[%s1372_s2 + $0x58] sm:$0xf0]  ;;  %v875_v43 = vld [vmem:[%s1372_s2 + $0xd4] sm:$0xf]  ;;  %v627_v45 = vld [vmem:[%s1372_s2 + $0x40] sm:$0xf] }
   0xb   :  { %297 = vmatpush.bf16.msrb.mxu0 %v656_v18  ;;  %v701_v44 = vld [vmem:[%s1372_s2 + $0xd8] sm:$0xf0]  ;;  %v858_v46 = vld [vmem:[%s1372_s2 + $0x44] sm:$0xf0]  ;;  %v691_v47 = vld [vmem:[%s1372_s2 + $0xc0] sm:$0xf]  ;;  %v640_v48 = vor.u32 %v859_v40, %v637_v42 }
   0xc   :  { %310 = vmatpush.bf16.msrb.mxu1 %v720_v23  ;;  %v874_v49 = vld [vmem:[%s1372_s2 + $0xc4] sm:$0xf0]  ;;  %v60_v50 = vld [vmem:[%s1374_s1] sm:$0xf]  ;;  %v704_v51 = vor.u32 %v875_v43, %v701_v44  ;;  %v628_v52 = vor.u32 %v858_v46, %v627_v45  ;;  %v857_v53 = vld [vmem:[%s1372_s2 + $0x44] sm:$0xf] }
   0xd   :  { %273 = vmatpush.bf16.msra.mxu2 %v636_v37  ;;  %v629_v54 = vld [vmem:[%s1372_s2 + $0x48] sm:$0xf0]  ;;  %v873_v55 = vld [vmem:[%s1372_s2 + $0xc4] sm:$0xf]  ;;  %v692_v56 = vor.u32 %v874_v49, %v691_v47  ;;  %591 = vmatmul.msk.bf16.vlgmr.msra.gmra.mxu0 %vm71_vm2, %v60_v50  ;;  %v619_v58 = vld [vmem:[%s1372_s2 + $0x30] sm:$0xf] }
   0xe   :  { %286 = vmatpush.bf16.msra.mxu3 %v700_v41  ;;  %v693_v57 = vld [vmem:[%s1372_s2 + $0xc8] sm:$0xf0]  ;;  %v856_v59 = vld [vmem:[%s1372_s2 + $0x34] sm:$0xf0]  ;;  %592 = vmatmul.msk.bf16.vlgmr.msra.gmra.mxu1 %vm71_vm2, %v60_v50  ;;  %v683_v60 = vld [vmem:[%s1372_s2 + $0xb0] sm:$0xf]  ;;  %v632_v62 = vor.u32 %v857_v53, %v629_v54 }
   0xf   :  { %298 = vmatpush.bf16.msrb.mxu0 %v648_v32  ;;  %v872_v61 = vld [vmem:[%s1372_s2 + $0xb4] sm:$0xf0]  ;;  %v696_v63 = vor.u32 %v873_v55, %v693_v57  ;;  %v620_v0 = vor.u32 %v856_v59, %v619_v58  ;;  %v855_v1 = vld [vmem:[%s1372_s2 + $0x34] sm:$0xf]  ;;  %v621_v2 = vld [vmem:[%s1372_s2 + $0x38] sm:$0xf0] }
  0x10   :  { %311 = vmatpush.bf16.msrb.mxu1 %v712_v36  ;;  %v871_v3 = vld [vmem:[%s1372_s2 + $0xb4] sm:$0xf]  ;;  %v684_v4 = vor.u32 %v872_v61, %v683_v60  ;;  %v685_v5 = vld [vmem:[%s1372_s2 + $0xb8] sm:$0xf0]  ;;  %v611_v6 = vld [vmem:[%s1372_s2 + $0x20] sm:$0xf]  ;;  %v624_v10 = vor.u32 %v855_v1, %v621_v2 }
  0x11   :  { %274 = vmatpush.bf16.msra.mxu2 %v628_v52  ;;  %v854_v7 = vld [vmem:[%s1372_s2 + $0x24] sm:$0xf0]  ;;  %v675_v8 = vld [vmem:[%s1372_s2 + $0xa0] sm:$0xf]  ;;  %v688_v11 = vor.u32 %v871_v3, %v685_v5  ;;  %v853_v13 = vld [vmem:[%s1372_s2 + $0x24] sm:$0xf] }
  0x12   :  { %287 = vmatpush.bf16.msra.mxu3 %v692_v56  ;;  %v870_v9 = vld [vmem:[%s1372_s2 + $0xa4] sm:$0xf0]  ;;  %v612_v12 = vor.u32 %v854_v7, %v611_v6  ;;  %v613_v14 = vld [vmem:[%s1372_s2 + $0x28] sm:$0xf0]  ;;  %v869_v15 = vld [vmem:[%s1372_s2 + $0xa4] sm:$0xf] }
  0x13   :  { %299 = vmatpush.bf16.msrb.mxu0 %v640_v48  ;;  %v676_v16 = vor.u32 %v870_v9, %v675_v8  ;;  %v677_v17 = vld [vmem:[%s1372_s2 + $0xa8] sm:$0xf0]  ;;  %v603_v18 = vld [vmem:[%s1372_s2 + $0x10] sm:$0xf]  ;;  %v852_v19 = vld [vmem:[%s1372_s2 + $0x14] sm:$0xf0]  ;;  %v616_v22 = vor.u32 %v853_v13, %v613_v14 }
  0x14   :  { %312 = vmatpush.bf16.msrb.mxu1 %v704_v51  ;;  %v667_v20 = vld [vmem:[%s1372_s2 + $0x90] sm:$0xf]  ;;  %v868_v21 = vld [vmem:[%s1372_s2 + $0x94] sm:$0xf0]  ;;  %v680_v23 = vor.u32 %v869_v15, %v677_v17  ;;  %v604_v24 = vor.u32 %v852_v19, %v603_v18  ;;  %v851_v25 = vld [vmem:[%s1372_s2 + $0x14] sm:$0xf] }
  0x15   :  { %275 = vmatpush.bf16.msra.mxu2 %v620_v0  ;;  %v605_v26 = vld [vmem:[%s1372_s2 + $0x18] sm:$0xf0]  ;;  %v867_v27 = vld [vmem:[%s1372_s2 + $0x94] sm:$0xf]  ;;  %v668_v28 = vor.u32 %v868_v21, %v667_v20  ;;  %v595_v30 = vld [vmem:[%s1372_s2] sm:$0xf] }
  0x16   :  { %288 = vmatpush.bf16.msra.mxu3 %v684_v4  ;;  %v669_v29 = vld [vmem:[%s1372_s2 + $0x98] sm:$0xf0]  ;;  %v850_v31 = vld [vmem:[%s1372_s2 + $0x4] sm:$0xf0]  ;;  %v659_v32 = vld [vmem:[%s1372_s2 + $0x80] sm:$0xf]  ;;  %v608_v34 = vor.u32 %v851_v25, %v605_v26 }
  0x17   :  { %300 = vmatpush.bf16.msrb.mxu0 %v632_v62  ;;  %v866_v33 = vld [vmem:[%s1372_s2 + $0x84] sm:$0xf0]  ;;  %v672_v35 = vor.u32 %v867_v27, %v669_v29  ;;  %v596_v36 = vor.u32 %v850_v31, %v595_v30  ;;  %v24_v37 = vld [vmem:[%s1375_s0] sm:$0xff]  ;;  %v597_v39 = vld [vmem:[%s1372_s2 + $0x8] sm:$0xf0] }
  0x18   :  { %313 = vmatpush.bf16.msrb.mxu1 %v696_v63  ;;  %v849_v38 = vld [vmem:[%s1372_s2 + $0x4] sm:$0xf]  ;;  %v660_v40 = vor.u32 %v866_v33, %v659_v32  ;;  %v25_v41 = vld [vmem:[%s1375_s0 + $0x8] sm:$0xff]  ;;  %v26_v44 = vpack.c.bf16 %v24_v37, %v24_v37  ;;  %v843_v48 = vld [vmem:[%s1376_s4 + $0xf0] sm:$0xf] }
  0x19   :  { %276 = vmatpush.bf16.msra.mxu2 %v612_v12  ;;  %v865_v42 = vld [vmem:[%s1372_s2 + $0x84] sm:$0xf]  ;;  %v661_v43 = vld [vmem:[%s1372_s2 + $0x88] sm:$0xf0]  ;;  %v600_v45 = vor.u32 %v849_v38, %v597_v39  ;;  %v27_v46 = vpack.c.bf16 %v25_v41, %v25_v41  ;;  %v914_v49 = vld [vmem:[%s1376_s4 + $0xf4] sm:$0xf0] }
  0x1a   :  { %289 = vmatpush.bf16.msra.mxu3 %v676_v16  ;;  %v664_v47 = vor.u32 %v865_v42, %v661_v43  ;;  %v913_v50 = vld [vmem:[%s1376_s4 + $0xf4] sm:$0xf]  ;;  %v844_v51 = vor.u32 %v914_v49, %v843_v48  ;;  %v845_v52 = vld [vmem:[%s1376_s4 + $0xf8] sm:$0xf0]  ;;  %v779_v53 = vld [vmem:[%s1376_s4 + $0x70] sm:$0xf] }
  0x1b   :  { %301 = vmatpush.bf16.msrb.mxu0 %v624_v10  ;;  %v898_v54 = vld [vmem:[%s1376_s4 + $0x74] sm:$0xf0]  ;;  %v848_v55 = vor.u32 %v913_v50, %v845_v52  ;;  %v897_v57 = vld [vmem:[%s1376_s4 + $0x74] sm:$0xf]  ;;  %v781_v58 = vld [vmem:[%s1376_s4 + $0x78] sm:$0xf0] }
  0x1c   :  { %314 = vmatpush.bf16.msrb.mxu1 %v688_v11  ;;  %v780_v56 = vor.u32 %v898_v54, %v779_v53  ;;  %v784_v59 = vor.u32 %v897_v57, %v781_v58  ;;  %v835_v60 = vld [vmem:[%s1376_s4 + $0xe0] sm:$0xf]  ;;  %v912_v61 = vld [vmem:[%s1376_s4 + $0xe4] sm:$0xf0]  ;;  %v911_v62 = vld [vmem:[%s1376_s4 + $0xe4] sm:$0xf] }
  0x1d   :  { %277 = vmatpush.bf16.msra.mxu2 %v604_v24  ;;  %v836_v63 = vor.u32 %v912_v61, %v835_v60  ;;  %v837_v0 = vld [vmem:[%s1376_s4 + $0xe8] sm:$0xf0]  ;;  %v771_v1 = vld [vmem:[%s1376_s4 + $0x60] sm:$0xf]  ;;  %v896_v2 = vld [vmem:[%s1376_s4 + $0x64] sm:$0xf0] }
  0x1e   :  { %290 = vmatpush.bf16.msra.mxu3 %v668_v28  ;;  %v840_v3 = vor.u32 %v911_v62, %v837_v0  ;;  %v772_v4 = vor.u32 %v896_v2, %v771_v1  ;;  %v895_v5 = vld [vmem:[%s1376_s4 + $0x64] sm:$0xf]  ;;  %v773_v6 = vld [vmem:[%s1376_s4 + $0x68] sm:$0xf0]  ;;  %v827_v7 = vld [vmem:[%s1376_s4 + $0xd0] sm:$0xf] }
  0x1f   :  { %302 = vmatpush.bf16.msrb.mxu0 %v616_v22  ;;  %v776_v8 = vor.u32 %v895_v5, %v773_v6  ;;  %v910_v9 = vld [vmem:[%s1376_s4 + $0xd4] sm:$0xf0]  ;;  %v909_v10 = vld [vmem:[%s1376_s4 + $0xd4] sm:$0xf]  ;;  %v829_v11 = vld [vmem:[%s1376_s4 + $0xd8] sm:$0xf0] }
  0x20   :  { %315 = vmatpush.bf16.msrb.mxu1 %v680_v23  ;;  %v828_v12 = vor.u32 %v910_v9, %v827_v7  ;;  %v832_v13 = vor.u32 %v909_v10, %v829_v11  ;;  %v763_v14 = vld [vmem:[%s1376_s4 + $0x50] sm:$0xf]  ;;  %v894_v15 = vld [vmem:[%s1376_s4 + $0x54] sm:$0xf0]  ;;  %v893_v16 = vld [vmem:[%s1376_s4 + $0x54] sm:$0xf] }
  0x21   :  { %278 = vmatpush.bf16.msra.mxu2 %v596_v36  ;;  %v764_v17 = vor.u32 %v894_v15, %v763_v14  ;;  %v765_v18 = vld [vmem:[%s1376_s4 + $0x58] sm:$0xf0]  ;;  %v819_v19 = vld [vmem:[%s1376_s4 + $0xc0] sm:$0xf]  ;;  %v908_v20 = vld [vmem:[%s1376_s4 + $0xc4] sm:$0xf0] }
  0x22   :  { %291 = vmatpush.bf16.msra.mxu3 %v660_v40  ;;  %v768_v21 = vor.u32 %v893_v16, %v765_v18  ;;  %v907_v22 = vld [vmem:[%s1376_s4 + $0xc4] sm:$0xf]  ;;  %v821_v23 = vld [vmem:[%s1376_s4 + $0xc8] sm:$0xf0]  ;;  %v755_v24 = vld [vmem:[%s1376_s4 + $0x40] sm:$0xf]  ;;  %v820_v25 = vor.u32 %v908_v20, %v819_v19 }
  0x23   :  { %303 = vmatpush.bf16.msrb.mxu0 %v608_v34  ;;  %v892_v26 = vld [vmem:[%s1376_s4 + $0x44] sm:$0xf0]  ;;  %v891_v27 = vld [vmem:[%s1376_s4 + $0x44] sm:$0xf]  ;;  %v757_v28 = vld [vmem:[%s1376_s4 + $0x48] sm:$0xf0]  ;;  %v824_v29 = vor.u32 %v907_v22, %v821_v23 }
  0x24   :  { %316 = vmatpush.bf16.msrb.mxu1 %v672_v35  ;;  %279 = vmatmul.bf16.vlgmr.msra.gmra.mxu2 %v26_v44  ;;  %v756_v30 = vor.u32 %v892_v26, %v755_v24  ;;  %v811_v31 = vld [vmem:[%s1376_s4 + $0xb0] sm:$0xf]  ;;  %v906_v32 = vld [vmem:[%s1376_s4 + $0xb4] sm:$0xf0]  ;;  %v760_v33 = vor.u32 %v891_v27, %v757_v28  ;;  %v905_v34 = vld [vmem:[%s1376_s4 + $0xb4] sm:$0xf] }
  0x25   :  { %292 = vmatmul.bf16.vlgmr.msra.gmra.mxu3 %v27_v46  ;;  %525 = vmatpush.bf16.msrb.mxu2 %v780_v56  ;;  %v813_v35 = vld [vmem:[%s1376_s4 + $0xb8] sm:$0xf0]  ;;  %v812_v36 = vor.u32 %v906_v32, %v811_v31  ;;  %v747_v38 = vld [vmem:[%s1376_s4 + $0x30] sm:$0xf]  ;;  %v890_v39 = vld [vmem:[%s1376_s4 + $0x34] sm:$0xf0] }
  0x26   :  { %538 = vmatpush.bf16.msrb.mxu3 %v844_v51  ;;  %v816_v37 = vor.u32 %v905_v34, %v813_v35  ;;  %v889_v40 = vld [vmem:[%s1376_s4 + $0x34] sm:$0xf]  ;;  %v748_v41 = vor.u32 %v890_v39, %v747_v38  ;;  %v749_v42 = vld [vmem:[%s1376_s4 + $0x38] sm:$0xf0]  ;;  %v803_v43 = vld [vmem:[%s1376_s4 + $0xa0] sm:$0xf] }
  0x27   :  { %304 = vmatpush.bf16.msrb.mxu0 %v600_v45  ;;  %v752_v45 = vor.u32 %v889_v40, %v749_v42  ;;  %v805_v48 = vld [vmem:[%s1376_s4 + $0xa8] sm:$0xf0]  ;;  %v739_v50 = vld [vmem:[%s1376_s4 + $0x20] sm:$0xf]  ;;  %v888_v51 = vld [vmem:[%s1376_s4 + $0x24] sm:$0xf0] }
  0x28   :  { %317 = vmatpush.bf16.msrb.mxu1 %v664_v47  ;;  %v903_v47 = vld [vmem:[%s1376_s4 + $0xa4] sm:$0xf]  ;;  %v740_v53 = vor.u32 %v888_v51, %v739_v50  ;;  %v741_v54 = vld [vmem:[%s1376_s4 + $0x28] sm:$0xf0]  ;;  %v902_v56 = vld [vmem:[%s1376_s4 + $0x94] sm:$0xf0] }
  0x29   :  { %526 = vmatpush.bf16.msrb.mxu2 %v772_v4  ;;  %v808_v49 = vor.u32 %v903_v47, %v805_v48  ;;  %v887_v52 = vld [vmem:[%s1376_s4 + $0x24] sm:$0xf]  ;;  %v797_v60 = vld [vmem:[%s1376_s4 + $0x98] sm:$0xf0]  ;;  %v731_v0 = vld [vmem:[%s1376_s4 + $0x10] sm:$0xf] }
  0x2a   :  { %305 = vmatmul.bf16.vlgmr.msrb.gmra.mxu0 %v26_v44  ;;  %539 = vmatpush.bf16.msrb.mxu3 %v836_v63  ;;  %v904_v44 = vld [vmem:[%s1376_s4 + $0xa4] sm:$0xf0]  ;;  %v744_v57 = vor.u32 %v887_v52, %v741_v54  ;;  %v886_v1 = vld [vmem:[%s1376_s4 + $0x14] sm:$0xf0]  ;;  %v885_v2 = vld [vmem:[%s1376_s4 + $0x14] sm:$0xf] }
  0x2b   :  { %318 = vmatmul.bf16.vlgmr.msrb.gmra.mxu1 %v27_v46  ;;  %551 = vmatpush.bf16.msra.mxu0 %v784_v59  ;;  %v804_v46 = vor.u32 %v904_v44, %v803_v43  ;;  %v901_v59 = vld [vmem:[%s1376_s4 + $0x94] sm:$0xf]  ;;  %v733_v4 = vld [vmem:[%s1376_s4 + $0x18] sm:$0xf0]  ;;  %v787_v5 = vld [vmem:[%s1376_s4 + $0x80] sm:$0xf] }
  0x2c   :  { %564 = vmatpush.bf16.msra.mxu1 %v848_v55  ;;  %v795_v55 = vld [vmem:[%s1376_s4 + $0x90] sm:$0xf]  ;;  %v800_v62 = vor.u32 %v901_v59, %v797_v60  ;;  %v900_v6 = vld [vmem:[%s1376_s4 + $0x84] sm:$0xf0]  ;;  %v736_v7 = vor.u32 %v885_v2, %v733_v4  ;;  %v899_v9 = vld [vmem:[%s1376_s4 + $0x84] sm:$0xf] }
  0x2d   :  { %527 = vmatpush.bf16.msrb.mxu2 %v764_v17  ;;  %v796_v58 = vor.u32 %v902_v56, %v795_v55  ;;  %v789_v10 = vld [vmem:[%s1376_s4 + $0x88] sm:$0xf0]  ;;  %v883_v14 = vld [vmem:[%s1376_s4 + $0x4] sm:$0xf] }
  0x2e   :  { %540 = vmatpush.bf16.msrb.mxu3 %v828_v12  ;;  %v792_v11 = vor.u32 %v899_v9, %v789_v10  ;;  %v723_v12 = vld [vmem:[%s1376_s4] sm:$0xf]  ;;  %v725_v16 = vld [vmem:[%s1376_s4 + $0x8] sm:$0xf0] }
  0x2f   :  { %552 = vmatpush.bf16.msra.mxu0 %v776_v8  ;;  %v788_v8 = vor.u32 %v900_v6, %v787_v5  ;;  %v728_v17 = vor.u32 %v883_v14, %v725_v16 }
  0x30   :  { %565 = vmatpush.bf16.msra.mxu1 %v840_v3  ;;  %v732_v3 = vor.u32 %v886_v1, %v731_v0 }
  0x31   :  { %528 = vmatpush.bf16.msrb.mxu2 %v756_v30 }
  0x32   :  { %541 = vmatpush.bf16.msrb.mxu3 %v820_v25 }
  0x33   :  { %553 = vmatpush.bf16.msra.mxu0 %v768_v21 }
  0x34   :  { %566 = vmatpush.bf16.msra.mxu1 %v832_v13  ;;  %v884_v13 = vld [vmem:[%s1376_s4 + $0x4] sm:$0xf0] }
  0x35   :  { %529 = vmatpush.bf16.msrb.mxu2 %v748_v41  ;;  %v724_v15 = vor.u32 %v884_v13, %v723_v12 }
  0x36   :  { %542 = vmatpush.bf16.msrb.mxu3 %v812_v36  ;;  %v359_v36 = vld [vmem:[%s1377_s5] sm:$0x3] }
  0x37   :  { %554 = vmatpush.bf16.msra.mxu0 %v760_v33  ;;  %v362_v38 = vperm.slane %v359_v36, 1  ;;  %v361_v43 = vperm.slane %v359_v36, 0 }
  0x38   :  { %567 = vmatpush.bf16.msra.mxu1 %v824_v29 }
  0x39   :  { %530 = vmatpush.bf16.msrb.mxu2 %v740_v53 }
  0x3a   :  { %543 = vmatpush.bf16.msrb.mxu3 %v804_v46 }
  0x3b   :  { %555 = vmatpush.bf16.msra.mxu0 %v752_v45 }
  0x3c   :  { %568 = vmatpush.bf16.msra.mxu1 %v816_v37 }
  0x3d   :  { %531 = vmatpush.bf16.msrb.mxu2 %v732_v3 }
  0x3e   :  { %544 = vmatpush.bf16.msrb.mxu3 %v796_v58 }
  0x3f   :  { %556 = vmatpush.bf16.msra.mxu0 %v744_v57 }
  0x40   :  { %569 = vmatpush.bf16.msra.mxu1 %v808_v49 }
  0x41   :  { %532 = vmatpush.bf16.msrb.mxu2 %v724_v15 }
  0x42   :  { %545 = vmatpush.bf16.msrb.mxu3 %v788_v8 }
  0x43   :  { %557 = vmatpush.bf16.msra.mxu0 %v736_v7 }
  0x44   :  { %570 = vmatpush.bf16.msra.mxu1 %v800_v62 }
  0x47   :  { %558 = vmatpush.bf16.msra.mxu0 %v728_v17 }
  0x48   :  { %571 = vmatpush.bf16.msra.mxu1 %v792_v11 }
  0x8a   :  { %v94_v61 = vpop.f32.mrf.mxu0 }
  0x8b   :  { %v107_v63 = vpop.f32.mrf.mxu1 }
  0x92   :  { %v96_v18 = vpop.f32.mrf.mxu0 }
  0x93   :  { %v109_v19 = vpop.f32.mrf.mxu1 }
  0xa7   :  { %v306_v20 = vpop.f32.mrf.mxu0  ;;  %v280_v24 = vpop.f32.mrf.mxu2 }
  0xa8   :  { %v307_v21 = vadd.f32 %v306_v20, %v107_v63  ;;  %v319_v22 = vpop.f32.mrf.mxu1  ;;  %v281_v25 = vadd.f32 %v280_v24, %v94_v61  ;;  %v293_v26 = vpop.f32.mrf.mxu3 }
  0xaa   :  { %v320_v23 = vadd.f32 %v319_v22, %v307_v21  ;;  %v294_v27 = vadd.f32 %v293_v26, %v281_v25 }
  0xac   :  { %916 = vtanh.f32 %v320_v23 }
  0xad   :  { %918 = vtanh.f32 %v294_v27 }
  0xaf   :  { %v308_v28 = vpop.f32.mrf.mxu0  ;;  %v282_v31 = vpop.f32.mrf.mxu2 }
  0xb0   :  { %v321_v29 = vpop.f32.mrf.mxu1  ;;  %v295_v33 = vpop.f32.mrf.mxu3 }
  0xb2   :  { %v917_v30 = vpop.eup %916 }
  0xb3   :  { %v326_v32 = vpack.c.bf16 %v917_v30, %v917_v30  ;;  %v919_v34 = vpop.eup %918 }
  0xb4   :  { %v325_v35 = vpack.c.bf16 %v919_v34, %v919_v34 }
  0xb5   :  { %546 = vmatmul.bf16.vlgmr.msrb.gmra.mxu3 %v326_v32  ;;  %572 = vmatmul.bf16.vlgmr.msra.gmra.mxu1 %v326_v32 }
  0xb6   :  { %533 = vmatmul.bf16.vlgmr.msrb.gmra.mxu2 %v325_v35  ;;  %559 = vmatmul.bf16.vlgmr.msra.gmra.mxu0 %v325_v35 }
 0x132   :  { %v573_v37 = vpop.f32.mrf.mxu1 }
 0x133   :  { %v560_v39 = vpop.f32.mrf.mxu0 }
 0x134   :  { %v561_v40 = vadd.f32 %v560_v39, %v362_v38 }
 0x136   :  { %v574_v41 = vadd.f32 %v573_v37, %v561_v40 }
 0x138   :  { %v547_v42 = vpop.f32.mrf.mxu3  ;;  %578 = vst [vmem:[%s1378_s6 + $0x8] sm:$0xff] %v574_v41 }
 0x139   :  { %v534_v45 = vpop.f32.mrf.mxu2 }
 0x13a   :  { %v575_v44 = vpop.f32.mrf.mxu1  ;;  %v535_v46 = vadd.f32 %v534_v45, %v361_v43 }
 0x13b   :  { %v562_v47 = vpop.f32.mrf.mxu0 }
 0x13c   :  { %v548_v48 = vadd.f32 %v547_v42, %v535_v46 }
 0x13e   :  { %577 = vst [vmem:[%s1378_s6] sm:$0xff] %v548_v48 }
 0x140   :  { %v549_v49 = vpop.f32.mrf.mxu3 }
 0x141   :  { %v536_v50 = vpop.f32.mrf.mxu2 }

</bundles_post_ra>
